<compile_context>
chip_gen: v6e
topology: v6e:2x2x1
jax: 0.10.0
libtpu: 0.0.40
codegen_flags: <defaults>
</compile_context>

<pallas_src>
import functools

import jax
import jax.numpy as jnp
import numpy as np
from jax.experimental import pallas as pl
from jax.experimental.pallas import tpu as pltpu


# ---------------------------------------------------------------------------
# Kernel: one grid step == B_blk batch elements, fully fused.
# ---------------------------------------------------------------------------
def _vw_attn_kernel(q_ref, k_ref, v_ref, masks_ref, aw_ref,
                    out_ref, attn_ref, *, inv_temp):
    q = q_ref[...]                      # (Bb, S, H)
    k = k_ref[...]                      # (Bb, S, H)
    v = v_ref[...]                      # (Bb, S, H)

    # scores: batched contraction of the last dims (no explicit transpose)
    s = jnp.einsum('bld,bmd->blm', q, k,
                   preferred_element_type=jnp.float32) * inv_temp

    # numerically-stable softmax over the last dim; denominator on the EUP
    s = s - jnp.max(s, axis=-1, keepdims=True)
    e = jnp.exp(s)
    attn = e * pl.reciprocal(jnp.sum(e, axis=-1, keepdims=True), approx=True)
    attn_ref[...] = attn.astype(attn_ref.dtype)     # (eval-mode dropout = id)

    masks = masks_ref[...]              # (6, S, S) float 0/1, static structure
    aw = aw_ref[...]                    # (6, H)    attn_weight

    # out[b,i,h] = sum_w aw[w,h] * [ (attn * mask_w) @ v ]_{b,i,h}
    acc = jnp.zeros(out_ref.shape, jnp.float32)
    for w in range(6):                  # tiny static unroll (6 categories)
        aw_attn = attn * masks[w][None, :, :]                       # (Bb,S,S)
        ctx = jnp.einsum('blm,bmh->blh', aw_attn, v,
                         preferred_element_type=jnp.float32)        # (Bb,S,H)
        acc = acc + ctx * aw[w][None, None, :]
    out_ref[...] = acc.astype(out_ref.dtype)


# ---------------------------------------------------------------------------
# Structured index / mask construction (same semantics as
# get_attn_weight_idx, done once at trace time with numpy).
# ---------------------------------------------------------------------------
def build_index(N, K, query=True):
    S = N * K + 1 if query else N * K
    index = np.zeros((S, S), dtype=np.int32)
    for row in range(N * K):
        index[row, :] = 2                       # different class
        index[row, -1] = 3                      # sample -> query
        lo = int(np.floor(row / K) * K)
        hi = int(np.ceil((row + 1) / K) * K)
        index[row, lo:hi] = 1                   # same class
        index[row, row] = 0                     # same sample
    if query:
        index[-1, :-1] = 4                      # query -> sample
        index[-1, -1] = 5                       # query self
    return index


# ---------------------------------------------------------------------------
# Wrapper
# ---------------------------------------------------------------------------
def vector_weighted_attention(q, k, v, attn_weight, N, K, *,
                              temperature, query=True, b_blk=None):
    B, S, H = q.shape
    expected_S = N * K + 1 if query else N * K
    assert S == expected_S, "sequence length must match N*K(+1)"
    assert attn_weight.shape == (6, H)

    # batch block size: amortize per-grid-step overhead, keep grid >= 2 steps
    if b_blk is None:
        b_blk = B if B <= 4 else 4
    while B % b_blk:
        b_blk -= 1
    grid_b = B // b_blk

    index = build_index(N, K, query=query)
    # six static 0/1 masks; the gather attn_weight[index] becomes masked matmuls
    masks = jnp.asarray(
        (index[None, :, :] == np.arange(6, dtype=np.int32)[:, None, None])
        .astype(np.float32))

    kernel = functools.partial(_vw_attn_kernel,
                               inv_temp=float(1.0 / temperature))

    out, attn = pl.pallas_call(
        kernel,
        out_shape=(
            jax.ShapeDtypeStruct((B, S, H), jnp.float32),   # output
            jax.ShapeDtypeStruct((B, S, S), jnp.float32),   # attention
        ),
        grid=(grid_b,),
        in_specs=[
            pl.BlockSpec((b_blk, S, H), lambda b: (b, 0, 0)),   # q
            pl.BlockSpec((b_blk, S, H), lambda b: (b, 0, 0)),   # k
            pl.BlockSpec((b_blk, S, H), lambda b: (b, 0, 0)),   # v
            pl.BlockSpec((6, S, S), lambda b: (0, 0, 0)),       # masks
            pl.BlockSpec((6, H), lambda b: (0, 0)),             # attn_weight
        ],
        out_specs=(
            pl.BlockSpec((b_blk, S, H), lambda b: (b, 0, 0)),
            pl.BlockSpec((b_blk, S, S), lambda b: (b, 0, 0)),
        ),
        compiler_params=pltpu.CompilerParams(
            dimension_semantics=("parallel",)),
    )(q, k, v, masks, attn_weight)

    return out, attn


# ---------------------------------------------------------------------------
# Pure-JAX reference for validation
# ---------------------------------------------------------------------------
def _reference(q, k, v, attn_weight, index, temperature):
    attn = jnp.einsum('bld,bmd->blm', q, k) / temperature
    attn = jax.nn.softmax(attn, axis=-1)
    W = attn_weight[jnp.asarray(index)]                     # (S, S, H)
    out = jnp.einsum('bij,ijh,bjh->bih', attn, W, v)
    return out, attn


if __name__ == "__main__":
    # small, module-consistent shapes: few-shot structure S = N*K + 1
    N, K = 2, 3
    S = N * K + 1                     # 7
    H = 32                            # hidden_size
    B = 8                             # batch (grid of 2 steps with b_blk=4)
    temperature = float(np.sqrt(H))

    key = jax.random.PRNGKey(0)
    kq, kk, kv, kw = jax.random.split(key, 4)
    q = jax.random.normal(kq, (B, S, H), jnp.float32)
    k = jax.random.normal(kk, (B, S, H), jnp.float32)
    v = jax.random.normal(kv, (B, S, H), jnp.float32)

    # attn_weight: xavier_uniform((6, H)) with tanh gain, as in the module
    gain = 5.0 / 3.0
    bound = gain * np.sqrt(6.0 / (6 + H))
    attn_weight = jax.random.uniform(kw, (6, H), jnp.float32,
                                     minval=-bound, maxval=bound)

    out, attn = vector_weighted_attention(
        q, k, v, attn_weight, N, K, temperature=temperature, query=True)
    jax.block_until_ready((out, attn))

    # correctness check against a pure-JAX reference (loose tol for approx rcp)
    ref_out, ref_attn = _reference(q, k, v, attn_weight,
                                   build_index(N, K, True), temperature)
    np.testing.assert_allclose(np.asarray(attn), np.asarray(ref_attn),
                               atol=2e-2, rtol=2e-2)
    np.testing.assert_allclose(np.asarray(out), np.asarray(ref_out),
                               atol=2e-2, rtol=2e-2)

    assert out.shape == (B, S, H)
    assert attn.shape == (B, S, S)
    print("KERNEL_OK")
</pallas_src>

<mosaic_0001>
module attributes {stable_mosaic.version = 11 : i64} {
  func.func @_vw_attn_kernel(%arg0: i32, %arg1: memref<4x7x32xf32, #tpu.memory_space<vmem>>, %arg2: memref<4x7x32xf32, #tpu.memory_space<vmem>>, %arg3: memref<4x7x32xf32, #tpu.memory_space<vmem>>, %arg4: memref<6x7x7xf32, #tpu.memory_space<vmem>>, %arg5: memref<6x32xf32, #tpu.memory_space<vmem>>, %arg6: memref<4x7x32xf32, #tpu.memory_space<vmem>>, %arg7: memref<4x7x7xf32, #tpu.memory_space<vmem>>) attributes {dimension_semantics = [#tpu.dimension_semantics<parallel>], iteration_bounds = array<i64: 2>, scalar_prefetch = 0 : i64, scratch_operands = 0 : i64, tpu.core_type = #tpu.core_type<tc>, window_params = [{transform_indices = @transform_0, window_bounds = array<i64: 4, 7, 32>}, {transform_indices = @transform_1, window_bounds = array<i64: 4, 7, 32>}, {transform_indices = @transform_2, window_bounds = array<i64: 4, 7, 32>}, {pipeline_mode = #tpu.pipeline_mode<synchronous>, transform_indices = @transform_3, window_bounds = array<i64: 6, 7, 7>}, {pipeline_mode = #tpu.pipeline_mode<synchronous>, transform_indices = @transform_4, window_bounds = array<i64: 6, 32>}, {transform_indices = @transform_5, window_bounds = array<i64: 4, 7, 32>}, {transform_indices = @transform_6, window_bounds = array<i64: 4, 7, 7>}]} {
    %c0 = arith.constant 0 : index
    %c0_0 = arith.constant 0 : index
    %c0_1 = arith.constant 0 : index
    %0 = vector.load %arg1[%c0, %c0_0, %c0_1] : memref<4x7x32xf32, #tpu.memory_space<vmem>>, vector<4x7x32xf32>
    %c0_2 = arith.constant 0 : index
    %c0_3 = arith.constant 0 : index
    %c0_4 = arith.constant 0 : index
    %1 = vector.load %arg2[%c0_2, %c0_3, %c0_4] : memref<4x7x32xf32, #tpu.memory_space<vmem>>, vector<4x7x32xf32>
    %c0_5 = arith.constant 0 : index
    %c0_6 = arith.constant 0 : index
    %c0_7 = arith.constant 0 : index
    %2 = vector.load %arg3[%c0_5, %c0_6, %c0_7] : memref<4x7x32xf32, #tpu.memory_space<vmem>>, vector<4x7x32xf32>
    "tpu.trace_start"() <{level = 10 : i32, message = "bld,bmd->blm"}> : () -> ()
    %cst = arith.constant dense<0.000000e+00> : vector<4x7x7xf32>
    %3 = tpu.matmul %0, %1, %cst {dimension_numbers = #tpu.dot_dimension_numbers<[2], [2], [1], [1], [0, 0, 0, 1, 1, 1], [0], [0]>} : vector<4x7x32xf32>, vector<4x7x32xf32>, vector<4x7x7xf32> -> vector<4x7x7xf32>
    "tpu.trace_stop"() : () -> ()
    %cst_8 = arith.constant 0.176776692 : f32
    %4 = vector.broadcast %cst_8 : f32 to vector<4x7x7xf32>
    %5 = arith.mulf %3, %4 : vector<4x7x7xf32>
    %cst_9 = arith.constant dense<0xFF800000> : vector<4x7xf32>
    %6 = vector.multi_reduction <maximumf>, %5, %cst_9 [2] : vector<4x7x7xf32> to vector<4x7xf32>
    %7 = vector.shape_cast %6 : vector<4x7xf32> to vector<4x7x1xf32>
    %8 = vector.broadcast %7 : vector<4x7x1xf32> to vector<4x7x7xf32>
    %9 = arith.subf %5, %8 : vector<4x7x7xf32>
    %10 = math.exp %9 : vector<4x7x7xf32>
    %cst_10 = arith.constant dense<0.000000e+00> : vector<4x7xf32>
    %11 = vector.multi_reduction <add>, %10, %cst_10 [2] : vector<4x7x7xf32> to vector<4x7xf32>
    %12 = vector.shape_cast %11 : vector<4x7xf32> to vector<4x7x1xf32>
    %13 = tpu.reciprocal %12 {approx = true} : vector<4x7x1xf32> -> vector<4x7x1xf32>
    %14 = vector.broadcast %13 : vector<4x7x1xf32> to vector<4x7x7xf32>
    %15 = arith.mulf %10, %14 : vector<4x7x7xf32>
    %c0_11 = arith.constant 0 : index
    %c0_12 = arith.constant 0 : index
    %c0_13 = arith.constant 0 : index
    %16 = vector.load %arg7[%c0_11, %c0_12, %c0_13] : memref<4x7x7xf32, #tpu.memory_space<vmem>>, vector<4x7x7xf32>
    tpu.vector_store %arg7[%c0_11, %c0_12, %c0_13], %15 {strides = array<i32>} : memref<4x7x7xf32, #tpu.memory_space<vmem>>, vector<4x7x7xf32>,
    %c0_14 = arith.constant 0 : index
    %c0_15 = arith.constant 0 : index
    %c0_16 = arith.constant 0 : index
    %17 = vector.load %arg4[%c0_14, %c0_15, %c0_16] : memref<6x7x7xf32, #tpu.memory_space<vmem>>, vector<6x7x7xf32>
    %c0_17 = arith.constant 0 : index
    %c0_18 = arith.constant 0 : index
    %18 = vector.load %arg5[%c0_17, %c0_18] : memref<6x32xf32, #tpu.memory_space<vmem>>, vector<6x32xf32>
    %cst_19 = arith.constant 0.000000e+00 : f32
    %19 = vector.broadcast %cst_19 : f32 to vector<4x7x32xf32>
    %20 = vector.extract_strided_slice %17 {offsets = [0, 0, 0], sizes = [1, 7, 7], strides = [1, 1, 1]} : vector<6x7x7xf32> to vector<1x7x7xf32>
    %21 = vector.shape_cast %20 : vector<1x7x7xf32> to vector<7x7xf32>
    %22 = vector.shape_cast %21 : vector<7x7xf32> to vector<1x7x7xf32>
    %23 = vector.broadcast %22 : vector<1x7x7xf32> to vector<4x7x7xf32>
    %24 = arith.mulf %15, %23 : vector<4x7x7xf32>
    "tpu.trace_start"() <{level = 10 : i32, message = "blm,bmh->blh"}> : () -> ()
    %cst_20 = arith.constant dense<0.000000e+00> : vector<4x7x32xf32>
    %25 = tpu.matmul %24, %2, %cst_20 {dimension_numbers = #tpu.dot_dimension_numbers<[2], [1], [1], [2], [0, 0, 0, 1, 1, 2], [0], [0]>} : vector<4x7x7xf32>, vector<4x7x32xf32>, vector<4x7x32xf32> -> vector<4x7x32xf32>
    "tpu.trace_stop"() : () -> ()
    %26 = vector.extract_strided_slice %18 {offsets = [0, 0], sizes = [1, 32], strides = [1, 1]} : vector<6x32xf32> to vector<1x32xf32>
    %27 = vector.shape_cast %26 : vector<1x32xf32> to vector<32xf32>
    %28 = vector.shape_cast %27 : vector<32xf32> to vector<1x1x32xf32>
    %29 = vector.broadcast %28 : vector<1x1x32xf32> to vector<4x7x32xf32>
    %30 = arith.mulf %25, %29 : vector<4x7x32xf32>
    %31 = arith.addf %19, %30 : vector<4x7x32xf32>
    %32 = vector.extract_strided_slice %17 {offsets = [1, 0, 0], sizes = [1, 7, 7], strides = [1, 1, 1]} : vector<6x7x7xf32> to vector<1x7x7xf32>
    %33 = vector.shape_cast %32 : vector<1x7x7xf32> to vector<7x7xf32>
    %34 = vector.shape_cast %33 : vector<7x7xf32> to vector<1x7x7xf32>
    %35 = vector.broadcast %34 : vector<1x7x7xf32> to vector<4x7x7xf32>
    %36 = arith.mulf %15, %35 : vector<4x7x7xf32>
    "tpu.trace_start"() <{level = 10 : i32, message = "blm,bmh->blh"}> : () -> ()
    %cst_21 = arith.constant dense<0.000000e+00> : vector<4x7x32xf32>
    %37 = tpu.matmul %36, %2, %cst_21 {dimension_numbers = #tpu.dot_dimension_numbers<[2], [1], [1], [2], [0, 0, 0, 1, 1, 2], [0], [0]>} : vector<4x7x7xf32>, vector<4x7x32xf32>, vector<4x7x32xf32> -> vector<4x7x32xf32>
    "tpu.trace_stop"() : () -> ()
    %38 = vector.extract_strided_slice %18 {offsets = [1, 0], sizes = [1, 32], strides = [1, 1]} : vector<6x32xf32> to vector<1x32xf32>
    %39 = vector.shape_cast %38 : vector<1x32xf32> to vector<32xf32>
    %40 = vector.shape_cast %39 : vector<32xf32> to vector<1x1x32xf32>
    %41 = vector.broadcast %40 : vector<1x1x32xf32> to vector<4x7x32xf32>
    %42 = arith.mulf %37, %41 : vector<4x7x32xf32>
    %43 = arith.addf %31, %42 : vector<4x7x32xf32>
    %44 = vector.extract_strided_slice %17 {offsets = [2, 0, 0], sizes = [1, 7, 7], strides = [1, 1, 1]} : vector<6x7x7xf32> to vector<1x7x7xf32>
    %45 = vector.shape_cast %44 : vector<1x7x7xf32> to vector<7x7xf32>
    %46 = vector.shape_cast %45 : vector<7x7xf32> to vector<1x7x7xf32>
    %47 = vector.broadcast %46 : vector<1x7x7xf32> to vector<4x7x7xf32>
    %48 = arith.mulf %15, %47 : vector<4x7x7xf32>
    "tpu.trace_start"() <{level = 10 : i32, message = "blm,bmh->blh"}> : () -> ()
    %cst_22 = arith.constant dense<0.000000e+00> : vector<4x7x32xf32>
    %49 = tpu.matmul %48, %2, %cst_22 {dimension_numbers = #tpu.dot_dimension_numbers<[2], [1], [1], [2], [0, 0, 0, 1, 1, 2], [0], [0]>} : vector<4x7x7xf32>, vector<4x7x32xf32>, vector<4x7x32xf32> -> vector<4x7x32xf32>
    "tpu.trace_stop"() : () -> ()
    %50 = vector.extract_strided_slice %18 {offsets = [2, 0], sizes = [1, 32], strides = [1, 1]} : vector<6x32xf32> to vector<1x32xf32>
    %51 = vector.shape_cast %50 : vector<1x32xf32> to vector<32xf32>
    %52 = vector.shape_cast %51 : vector<32xf32> to vector<1x1x32xf32>
    %53 = vector.broadcast %52 : vector<1x1x32xf32> to vector<4x7x32xf32>
    %54 = arith.mulf %49, %53 : vector<4x7x32xf32>
    %55 = arith.addf %43, %54 : vector<4x7x32xf32>
    %56 = vector.extract_strided_slice %17 {offsets = [3, 0, 0], sizes = [1, 7, 7], strides = [1, 1, 1]} : vector<6x7x7xf32> to vector<1x7x7xf32>
    %57 = vector.shape_cast %56 : vector<1x7x7xf32> to vector<7x7xf32>
    %58 = vector.shape_cast %57 : vector<7x7xf32> to vector<1x7x7xf32>
    %59 = vector.broadcast %58 : vector<1x7x7xf32> to vector<4x7x7xf32>
    %60 = arith.mulf %15, %59 : vector<4x7x7xf32>
    "tpu.trace_start"() <{level = 10 : i32, message = "blm,bmh->blh"}> : () -> ()
    %cst_23 = arith.constant dense<0.000000e+00> : vector<4x7x32xf32>
    %61 = tpu.matmul %60, %2, %cst_23 {dimension_numbers = #tpu.dot_dimension_numbers<[2], [1], [1], [2], [0, 0, 0, 1, 1, 2], [0], [0]>} : vector<4x7x7xf32>, vector<4x7x32xf32>, vector<4x7x32xf32> -> vector<4x7x32xf32>
    "tpu.trace_stop"() : () -> ()
    %62 = vector.extract_strided_slice %18 {offsets = [3, 0], sizes = [1, 32], strides = [1, 1]} : vector<6x32xf32> to vector<1x32xf32>
    %63 = vector.shape_cast %62 : vector<1x32xf32> to vector<32xf32>
    %64 = vector.shape_cast %63 : vector<32xf32> to vector<1x1x32xf32>
    %65 = vector.broadcast %64 : vector<1x1x32xf32> to vector<4x7x32xf32>
    %66 = arith.mulf %61, %65 : vector<4x7x32xf32>
    %67 = arith.addf %55, %66 : vector<4x7x32xf32>
    %68 = vector.extract_strided_slice %17 {offsets = [4, 0, 0], sizes = [1, 7, 7], strides = [1, 1, 1]} : vector<6x7x7xf32> to vector<1x7x7xf32>
    %69 = vector.shape_cast %68 : vector<1x7x7xf32> to vector<7x7xf32>
    %70 = vector.shape_cast %69 : vector<7x7xf32> to vector<1x7x7xf32>
    %71 = vector.broadcast %70 : vector<1x7x7xf32> to vector<4x7x7xf32>
    %72 = arith.mulf %15, %71 : vector<4x7x7xf32>
    "tpu.trace_start"() <{level = 10 : i32, message = "blm,bmh->blh"}> : () -> ()
    %cst_24 = arith.constant dense<0.000000e+00> : vector<4x7x32xf32>
    %73 = tpu.matmul %72, %2, %cst_24 {dimension_numbers = #tpu.dot_dimension_numbers<[2], [1], [1], [2], [0, 0, 0, 1, 1, 2], [0], [0]>} : vector<4x7x7xf32>, vector<4x7x32xf32>, vector<4x7x32xf32> -> vector<4x7x32xf32>
    "tpu.trace_stop"() : () -> ()
    %74 = vector.extract_strided_slice %18 {offsets = [4, 0], sizes = [1, 32], strides = [1, 1]} : vector<6x32xf32> to vector<1x32xf32>
    %75 = vector.shape_cast %74 : vector<1x32xf32> to vector<32xf32>
    %76 = vector.shape_cast %75 : vector<32xf32> to vector<1x1x32xf32>
    %77 = vector.broadcast %76 : vector<1x1x32xf32> to vector<4x7x32xf32>
    %78 = arith.mulf %73, %77 : vector<4x7x32xf32>
    %79 = arith.addf %67, %78 : vector<4x7x32xf32>
    %80 = vector.extract_strided_slice %17 {offsets = [5, 0, 0], sizes = [1, 7, 7], strides = [1, 1, 1]} : vector<6x7x7xf32> to vector<1x7x7xf32>
    %81 = vector.shape_cast %80 : vector<1x7x7xf32> to vector<7x7xf32>
    %82 = vector.shape_cast %81 : vector<7x7xf32> to vector<1x7x7xf32>
    %83 = vector.broadcast %82 : vector<1x7x7xf32> to vector<4x7x7xf32>
    %84 = arith.mulf %15, %83 : vector<4x7x7xf32>
    "tpu.trace_start"() <{level = 10 : i32, message = "blm,bmh->blh"}> : () -> ()
    %cst_25 = arith.constant dense<0.000000e+00> : vector<4x7x32xf32>
    %85 = tpu.matmul %84, %2, %cst_25 {dimension_numbers = #tpu.dot_dimension_numbers<[2], [1], [1], [2], [0, 0, 0, 1, 1, 2], [0], [0]>} : vector<4x7x7xf32>, vector<4x7x32xf32>, vector<4x7x32xf32> -> vector<4x7x32xf32>
    "tpu.trace_stop"() : () -> ()
    %86 = vector.extract_strided_slice %18 {offsets = [5, 0], sizes = [1, 32], strides = [1, 1]} : vector<6x32xf32> to vector<1x32xf32>
    %87 = vector.shape_cast %86 : vector<1x32xf32> to vector<32xf32>
    %88 = vector.shape_cast %87 : vector<32xf32> to vector<1x1x32xf32>
    %89 = vector.broadcast %88 : vector<1x1x32xf32> to vector<4x7x32xf32>
    %90 = arith.mulf %85, %89 : vector<4x7x32xf32>
    %91 = arith.addf %79, %90 : vector<4x7x32xf32>
    %c0_26 = arith.constant 0 : index
    %c0_27 = arith.constant 0 : index
    %c0_28 = arith.constant 0 : index
    %92 = vector.load %arg6[%c0_26, %c0_27, %c0_28] : memref<4x7x32xf32, #tpu.memory_space<vmem>>, vector<4x7x32xf32>
    tpu.vector_store %arg6[%c0_26, %c0_27, %c0_28], %91 {strides = array<i32>} : memref<4x7x32xf32, #tpu.memory_space<vmem>>, vector<4x7x32xf32>,
    return
  }
  func.func @transform_0(%arg0: i32) -> (i32, i32, i32) {
    %c0_i32 = arith.constant 0 : i32
    %c0_i32_0 = arith.constant 0 : i32
    %c0_i32_1 = arith.constant 0 : i32
    return %arg0, %c0_i32, %c0_i32_0 : i32, i32, i32
  }
  func.func @transform_1(%arg0: i32) -> (i32, i32, i32) {
    %c0_i32 = arith.constant 0 : i32
    %c0_i32_0 = arith.constant 0 : i32
    %c0_i32_1 = arith.constant 0 : i32
    return %arg0, %c0_i32, %c0_i32_0 : i32, i32, i32
  }
  func.func @transform_2(%arg0: i32) -> (i32, i32, i32) {
    %c0_i32 = arith.constant 0 : i32
    %c0_i32_0 = arith.constant 0 : i32
    %c0_i32_1 = arith.constant 0 : i32
    return %arg0, %c0_i32, %c0_i32_0 : i32, i32, i32
  }
  func.func @transform_3(%arg0: i32) -> (i32, i32, i32) {
    %c0_i32 = arith.constant 0 : i32
    %c0_i32_0 = arith.constant 0 : i32
    %c0_i32_1 = arith.constant 0 : i32
    %c0_i32_2 = arith.constant 0 : i32
    return %c0_i32, %c0_i32_0, %c0_i32_1 : i32, i32, i32
  }
  func.func @transform_4(%arg0: i32) -> (i32, i32) {
    %c0_i32 = arith.constant 0 : i32
    %c0_i32_0 = arith.constant 0 : i32
    %c0_i32_1 = arith.constant 0 : i32
    return %c0_i32, %c0_i32_0 : i32, i32
  }
  func.func @transform_5(%arg0: i32) -> (i32, i32, i32) {
    %c0_i32 = arith.constant 0 : i32
    %c0_i32_0 = arith.constant 0 : i32
    %c0_i32_1 = arith.constant 0 : i32
    return %arg0, %c0_i32, %c0_i32_0 : i32, i32, i32
  }
  func.func @transform_6(%arg0: i32) -> (i32, i32, i32) {
    %c0_i32 = arith.constant 0 : i32
    %c0_i32_0 = arith.constant 0 : i32
    %c0_i32_1 = arith.constant 0 : i32
    return %arg0, %c0_i32, %c0_i32_0 : i32, i32, i32
  }
}

</mosaic_0001>

<bundles_post_ra>
// kernel: tpu_custom_call.1
= control target key start
LH: loop header
LB: loop body
LE: loop exit
PB: predicated region body
PF: predicated region fallthrough
CT: control target
= control target key end

     0   :  { %s3011_s21 = smov 0   ;;  %s3298_s0 = inlined_call_operand.vmem [shape: f32[8,7,32], index: 0, kind: input, shape index: {}]   ;;  %s3299_s1 = inlined_call_operand.vmem [shape: f32[8,7,32], index: 1, kind: input, shape index: {}]   ;;  %s3300_s2 = inlined_call_operand.vmem [shape: f32[8,7,32], index: 2, kind: input, shape index: {}]   ;;  %s3301_s3 = inlined_call_operand.vmem [shape: f32[6,7,7], index: 3, kind: input, shape index: {}]   ;;  %s3302_s4 = inlined_call_operand.vmem [shape: f32[6,32], index: 4, kind: input, shape index: {}]   ;;  %s3303_s5 = inlined_call_operand.vmem [shape: f32[8,7,32], index: 5, kind: output, shape index: {0}]   ;;  %s3304_s6 = inlined_call_operand.vmem [shape: f32[8,7,7], index: 6, kind: output, shape index: {1}]  }
   0x1 LB: > { %s2671_s22 = sadd.s32 4294967295, %s2972_s21   ;;  %p2675_p0 = scmp.ge.s32.totalorder %s2972_s21, 1  ;;  %s2972_s21 = sphi %s3011_s21, %s17_s21  }
   0x2   : > { %p238_p1 = scmp.lt.s32.totalorder %s2972_s21, 3 }
   0x4   : > { %p239_p2 = pnand %p2675_p0, %p238_p1 }
   0x5   : > { %s2676_s23 = sshll.u32 (!%p239_p2), %s2671_s22, 2 }
   0x6   : > { %242 = sbr.rel (%p239_p2) target bundleno = 773 (0x305), region = 40  ;;  %p284_p3 = scmp.lt.s32.totalorder (!%p239_p2), %s2676_s23, 7 }
   0xb   : > { %v2974_v0 = vmov 0.0   ;;  %vm2975_vm0 = vmmov 0   ;;  %s3306_s23 = smov (!%p284_p3, %s2676_s23), 7  ;;  %vm325_vm1 = vcmask 261120   ;;  %vm634_vm2 = vcmask 55296  }
   0xc   : > { %2800 = vmatprep.subr.mxu0 %v2974_v0  ;;  %2802 = vmatprep.mubr.msk.f32.mxu0 %vm2975_vm0, %v2974_v0  ;;  %s3025_s24 = sshll.u32 %s3306_s23, 3  ;;  %vm698_vm3 = vcmask 1046528   ;;  %v683_v52 = vld [vmem:[%s3301_s3] sm:$0x7f]  ;;  %vm694_vm4 = vcmask 56320   ;;  %vm2552_vm5 = vcmask 260096  }
   0xd   : > { %2805 = vmatprep.subr.mxu1 %v2974_v0  ;;  %2807 = vmatprep.mubr.msk.f32.mxu1 %vm2975_vm0, %v2974_v0  ;;  %s293_s27 = scalar_lea.vmem %s3299_s1, %s3025_s24  ;;  %s287_s30 = scalar_lea.vmem %s3298_s0, %s3025_s24 }
   0xe   : > { %v317_v1 = vld [vmem:[%s293_s27] sm:$0x7f]  ;;  %v318_v2 = vld [vmem:[%s293_s27 + $0x8] sm:$0x7f]  ;;  %v319_v5 = vld [vmem:[%s293_s27 + $0x10] sm:$0x7f]  ;;  %s3067_s9 = scalar_lea.vmem %s3300_s2, %s3025_s24  ;;  %s311_s12 = scalar_lea.vmem %s3304_s6, %s3025_s24 }
   0xf   : > { %2801 = vmatpush3.xpose.msk.msra.mxu0 %vm325_vm1, %v317_v1  ;;  %v313_v3 = vld [vmem:[%s287_s30] sm:$0x7f]  ;;  %2806 = vmatpush3.xpose.msk.msra.mxu1 %vm325_vm1, %v318_v2  ;;  %v314_v4 = vld [vmem:[%s287_s30 + $0x8] sm:$0x7f]  ;;  %v320_v6 = vld [vmem:[%s293_s27 + $0x18] sm:$0x7f]  ;;  %s305_s7 = scalar_lea.vmem %s3303_s5, %s3025_s24 }
  0x10   : > { %2810 = vmatprep.subr.mxu0 %v2974_v0  ;;  %2815 = vmatprep.subr.mxu1 %v2974_v0  ;;  %v315_v7 = vld [vmem:[%s287_s30 + $0x10] sm:$0x7f]  ;;  %v316_v8 = vld [vmem:[%s287_s30 + $0x18] sm:$0x7f]  ;;  %v3070_v45 = vld [vmem:[%s3067_s9] sm:$0x7f] }
  0x11   : > { %v3076_v46 = vld [vmem:[%s3067_s9 + $0x8] sm:$0x7f]  ;;  %v3094_v55 = vld [vmem:[%s3067_s9 + $0x10] sm:$0x7f]  ;;  %v3109_v61 = vld [vmem:[%s3067_s9 + $0x18] sm:$0x7f] }
  0x12   : > { %2803 = vmatmul.mubr.msk.f32.vlgmr.msra.gmra.mxu0 %vm325_vm1, %v313_v3  ;;  %2808 = vmatmul.mubr.msk.f32.vlgmr.msra.gmra.mxu1 %vm325_vm1, %v314_v4  ;;  %v684_v2 = vld [vmem:[%s3301_s3 + $0x8] sm:$0x7f] }
  0x13   : > { %2811 = vmatpush3.xpose.msk.msra.mxu0 %vm325_vm1, %v319_v5  ;;  %2812 = vmatprep.mubr.msk.f32.mxu0 %vm2975_vm0, %v2974_v0 }
  0x14   : > { %2816 = vmatpush3.xpose.msk.msra.mxu1 %vm325_vm1, %v320_v6  ;;  %2817 = vmatprep.mubr.msk.f32.mxu1 %vm2975_vm0, %v2974_v0 }
  0x15   : > { %2820 = vmatprep.subr.mxu0 %v2974_v0  ;;  %2825 = vmatprep.subr.mxu1 %v2974_v0 }
  0x16   : > { %2813 = vmatmul.mubr.msk.f32.vlgmr.msra.gmra.mxu0 %vm325_vm1, %v315_v7  ;;  %v685_v7 = vld [vmem:[%s3301_s3 + $0x10] sm:$0x7f] }
  0x17   : > { %2818 = vmatmul.mubr.msk.f32.vlgmr.msra.gmra.mxu1 %vm325_vm1, %v316_v8  ;;  %2822 = vmatprep.mubr.msk.f32.mxu0 %vm2975_vm0, %v2974_v0 }
  0x18   : > { %2827 = vmatprep.mubr.msk.f32.mxu1 %vm2975_vm0, %v2974_v0  ;;  %2821 = vmatpush3.msk.msra.mxu0 %vm698_vm3, %v3070_v45 }
  0x19   : > { %2830 = vmatprep.subr.mxu0 %v2974_v0  ;;  %2826 = vmatpush3.msk.msra.mxu1 %vm698_vm3, %v3076_v46 }
  0x1a   : > { %2835 = vmatprep.subr.mxu1 %v2974_v0 }
  0xd2   : > { %v398_v9 = vpop.f32.mrf.mxu0  ;;  %v474_v10 = vpop.f32.mrf.mxu1 }
  0xd3   : > { %v630_v11 = vmul.f32 0.17677669, %v398_v9  ;;  %v631_v12 = vmul.f32 0.17677669, %v474_v10 }
  0xd4   : > { %v2804_v13 = vpop.f32.mrf.mxu0  ;;  %v2809_v14 = vpop.f32.mrf.mxu1 }
  0xd5   : > { %v635_v15 = vsel %vm634_vm2, %v630_v11, -inf  ;;  %v638_v19 = vsel %vm634_vm2, %v631_v12, -inf }
  0xd6   : > { %636 = vmax.xlane.f32.xlu0 %v635_v15  ;;  %v550_v16 = vpop.f32.mrf.mxu0 }
  0xd7   : > { %v632_v17 = vmul.f32 0.17677669, %v550_v16  ;;  %v626_v18 = vpop.f32.mrf.mxu1 }
  0xd8   : > { %v2814_v20 = vpop.f32.mrf.mxu0  ;;  %v633_v21 = vmul.f32 0.17677669, %v626_v18 }
  0xd9   : > { %v641_v22 = vsel %vm634_vm2, %v632_v17, -inf  ;;  %v2819_v23 = vpop.f32.mrf.mxu1 }
  0xda   : > { %639 = vmax.xlane.f32.xlu0 %v638_v19  ;;  %642 = vmax.xlane.f32.xlu1 %v641_v22  ;;  %v644_v24 = vsel %vm634_vm2, %v633_v21, -inf  ;;  %v688_v22 = vld [vmem:[%s3301_s3 + $0x28] sm:$0x7f] }
  0xde   : > { %645 = vmax.xlane.f32.xlu1 %v644_v24 }
 0x15f   : > { %v637_v25 = vpop.xlane.xlu0 %636 }
 0x160   : > { %v647_v26 = vsub.f32 %v630_v11, %v637_v25 }
 0x162   : > { %v651_v27 = vmul.f32 1.442695, %v647_v26 }
 0x163   : > { %v640_v28 = vpop.xlane.xlu0 %639  ;;  %v643_v29 = vpop.xlane.xlu1 %642 }
 0x164   : > { %2950 = vpow2.f32 %v651_v27  ;;  %v648_v30 = vsub.f32 %v631_v12, %v640_v28  ;;  %v649_v31 = vsub.f32 %v632_v17, %v643_v29  ;;  %v686_v12 = vld [vmem:[%s3301_s3 + $0x18] sm:$0x7f]  ;;  %v687_v17 = vld [vmem:[%s3301_s3 + $0x20] sm:$0x7f] }
 0x166   : > { %v653_v32 = vmul.f32 1.442695, %v648_v30  ;;  %v655_v33 = vmul.f32 1.442695, %v649_v31 }
 0x167   : > { %v646_v34 = vpop.xlane.xlu1 %645 }
 0x168   : > { %2952 = vpow2.f32 %v653_v32  ;;  %v650_v35 = vsub.f32 %v633_v21, %v646_v34 }
 0x169   : > { %2954 = vpow2.f32 %v655_v33 }
 0x16a   : > { %v657_v36 = vmul.f32 1.442695, %v650_v35 }
 0x16c   : > { %2956 = vpow2.f32 %v657_v36 }
 0x171   : > { %v2951_v37 = vpop.eup %2950 }
 0x172   : > { %v659_v38 = vsel %vm634_vm2, %v2951_v37, 0.0 }
 0x173   : > { %660 = vadd.xlane.f32.xlu0 %v659_v38 }
 0x175   : > { %v2953_v39 = vpop.eup %2952 }
 0x176   : > { %v2955_v40 = vpop.eup %2954  ;;  %v662_v41 = vsel %vm634_vm2, %v2953_v39, 0.0 }
 0x177   : > { %663 = vadd.xlane.f32.xlu1 %v662_v41  ;;  %v665_v42 = vsel %vm634_vm2, %v2955_v40, 0.0 }
 0x178   : > { %666 = vadd.xlane.f32.xlu0 %v665_v42 }
 0x179   : > { %v2957_v43 = vpop.eup %2956 }
 0x17a   : > { %v668_v44 = vsel %vm634_vm2, %v2957_v43, 0.0 }
 0x17b   : > { %669 = vadd.xlane.f32.xlu1 %v668_v44 }
 0x1fc   : > { %v661_v47 = vpop.xlane.xlu0 %660 }
 0x1fd   : > { %2958 = vrcp.f32 %v661_v47 }
 0x200   : > { %v664_v48 = vpop.xlane.xlu1 %663 }
 0x201   : > { %v667_v49 = vpop.xlane.xlu0 %666  ;;  %2960 = vrcp.f32 %v664_v48 }
 0x202   : > { %2962 = vrcp.f32 %v667_v49 }
 0x204   : > { %v670_v50 = vpop.xlane.xlu1 %669 }
 0x205   : > { %2964 = vrcp.f32 %v670_v50 }
 0x20a   : > { %v2959_v51 = vpop.eup %2958 }
 0x20b   : > { %v3088_v53 = vmul.f32 %v2959_v51, %v2951_v37 }
 0x20d   : > { %679 = vst.msk [vmem:[%s311_s12] sm:$0x7f] %vm634_vm2, %v3088_v53  ;;  %v690_v54 = vmul.f32 %v683_v52, %v3088_v53  ;;  %v1012_v4 = vmul.f32 %v684_v2, %v3088_v53  ;;  %v1320_v9 = vmul.f32 %v685_v7, %v3088_v53  ;;  %v1628_v14 = vmul.f32 %v686_v12, %v3088_v53 }
 0x20e   : > { %v2961_v56 = vpop.eup %2960  ;;  %v1936_v19 = vmul.f32 %v687_v17, %v3088_v53  ;;  %v2244_v24 = vmul.f32 %v688_v22, %v3088_v53 }
 0x20f   : > { %v2963_v57 = vpop.eup %2962  ;;  %v3096_v58 = vmul.f32 %v2961_v56, %v2953_v39  ;;  %2823 = vmatmul.mubr.msk.f32.vlgmr.msra.gmra.mxu0 %vm694_vm4, %v690_v54 }
 0x210   : > { %v3099_v59 = vmul.f32 %v2963_v57, %v2955_v40  ;;  %2831 = vmatpush3.msk.msra.mxu0 %vm698_vm3, %v3094_v55  ;;  %2832 = vmatprep.mubr.msk.f32.mxu0 %vm2975_vm0, %v2974_v0  ;;  %v689_v57 = vld [vmem:[%s3302_s4] sm:$0x3f] }
 0x211   : > { %680 = vst.msk [vmem:[%s311_s12 + $0x8] sm:$0x7f] %vm634_vm2, %v3096_v58  ;;  %v691_v60 = vmul.f32 %v683_v52, %v3096_v58  ;;  %2840 = vmatprep.subr.mxu0 %v2974_v0  ;;  %v1013_v5 = vmul.f32 %v684_v2, %v3096_v58  ;;  %v1321_v10 = vmul.f32 %v685_v7, %v3096_v58 }
 0x212   : > { %v2965_v62 = vpop.eup %2964  ;;  %681 = vst.msk [vmem:[%s311_s12 + $0x10] sm:$0x7f] %vm634_vm2, %v3099_v59  ;;  %v692_v63 = vmul.f32 %v683_v52, %v3099_v59  ;;  %v1014_v6 = vmul.f32 %v684_v2, %v3099_v59  ;;  %v1322_v11 = vmul.f32 %v685_v7, %v3099_v59  ;;  %v1629_v15 = vmul.f32 %v686_v12, %v3096_v58 }
 0x213   : > { %v3115_v1 = vmul.f32 %v2965_v62, %v2957_v43  ;;  %2828 = vmatmul.mubr.msk.f32.vlgmr.msra.gmra.mxu1 %vm694_vm4, %v691_v60  ;;  %v1630_v16 = vmul.f32 %v686_v12, %v3099_v59  ;;  %v1937_v20 = vmul.f32 %v687_v17, %v3096_v58  ;;  %v1938_v21 = vmul.f32 %v687_v17, %v3099_v59 }
 0x214   : > { %2833 = vmatmul.mubr.msk.f32.vlgmr.msra.gmra.mxu0 %vm694_vm4, %v692_v63  ;;  %2836 = vmatpush3.msk.msra.mxu1 %vm698_vm3, %v3109_v61  ;;  %v2245_v25 = vmul.f32 %v688_v22, %v3096_v58  ;;  %v2246_v26 = vmul.f32 %v688_v22, %v3099_v59  ;;  %v1000_v43 = vlaneseq }
 0x215   : > { %682 = vst.msk [vmem:[%s311_s12 + $0x18] sm:$0x7f] %vm634_vm2, %v3115_v1  ;;  %2837 = vmatprep.mubr.msk.f32.mxu1 %vm2975_vm0, %v2974_v0  ;;  %2841 = vmatpush3.msk.msra.mxu0 %vm698_vm3, %v3070_v45  ;;  %v693_v3 = vmul.f32 %v683_v52, %v3115_v1  ;;  %v1015_v8 = vmul.f32 %v684_v2, %v3115_v1 }
 0x216   : > { %2842 = vmatprep.mubr.msk.f32.mxu0 %vm2975_vm0, %v2974_v0  ;;  %2845 = vmatprep.subr.mxu1 %v2974_v0  ;;  %v1323_v13 = vmul.f32 %v685_v7, %v3115_v1  ;;  %v1631_v18 = vmul.f32 %v686_v12, %v3115_v1  ;;  %v1939_v23 = vmul.f32 %v687_v17, %v3115_v1  ;;  %v1001_v48 = vshrl.u32 %v1000_v43, 7 }
 0x217   : > { %2838 = vmatmul.mubr.msk.f32.vlgmr.msra.gmra.mxu1 %vm694_vm4, %v693_v3  ;;  %2850 = vmatprep.subr.mxu0 %v2974_v0  ;;  %v2247_v27 = vmul.f32 %v688_v22, %v3115_v1 }
 0x218   : > { %2843 = vmatmul.mubr.msk.f32.vlgmr.msra.gmra.mxu0 %vm694_vm4, %v1012_v4  ;;  %2846 = vmatpush3.msk.msra.mxu1 %vm698_vm3, %v3076_v46  ;;  %v1310_v51 = vsub.s32 1, %v1001_v48  ;;  %v1002_v54 = vsub.s32 0, %v1001_v48  ;;  %v1926_v60 = vsub.s32 3, %v1001_v48  ;;  %v2234_v3 = vsub.s32 4, %v1001_v48 }
 0x219   : > { %2847 = vmatprep.mubr.msk.f32.mxu1 %vm2975_vm0, %v2974_v0  ;;  %2851 = vmatpush3.msk.msra.mxu0 %vm698_vm3, %v3094_v55 }
 0x21a   : > { %2852 = vmatprep.mubr.msk.f32.mxu0 %vm2975_vm0, %v2974_v0  ;;  %2855 = vmatprep.subr.mxu1 %v2974_v0  ;;  %v1311_v59 = vrot.slane %v689_v57, %v1310_v51  ;;  %v1003_v63 = vrot.slane %v689_v57, %v1002_v54  ;;  %v2235_v12 = vrot.slane %v689_v57, %v2234_v3 }
 0x21b   : > { %2848 = vmatmul.mubr.msk.f32.vlgmr.msra.gmra.mxu1 %vm694_vm4, %v1013_v5  ;;  %2860 = vmatprep.subr.mxu0 %v2974_v0 }
 0x21c   : > { %2853 = vmatmul.mubr.msk.f32.vlgmr.msra.gmra.mxu0 %vm694_vm4, %v1014_v6  ;;  %2856 = vmatpush3.msk.msra.mxu1 %vm698_vm3, %v3109_v61  ;;  %v1927_v6 = vrot.slane %v689_v57, %v1926_v60 }
 0x21d   : > { %2857 = vmatprep.mubr.msk.f32.mxu1 %vm2975_vm0, %v2974_v0  ;;  %2861 = vmatpush3.msk.msra.mxu0 %vm698_vm3, %v3070_v45 }
 0x21e   : > { %2862 = vmatprep.mubr.msk.f32.mxu0 %vm2975_vm0, %v2974_v0  ;;  %2865 = vmatprep.subr.mxu1 %v2974_v0 }
 0x21f   : > { %2858 = vmatmul.mubr.msk.f32.vlgmr.msra.gmra.mxu1 %vm694_vm4, %v1015_v8  ;;  %2870 = vmatprep.subr.mxu0 %v2974_v0 }
 0x220   : > { %2863 = vmatmul.mubr.msk.f32.vlgmr.msra.gmra.mxu0 %vm694_vm4, %v1320_v9  ;;  %2866 = vmatpush3.msk.msra.mxu1 %vm698_vm3, %v3076_v46  ;;  %v2542_v9 = vsub.s32 5, %v1001_v48 }
 0x221   : > { %2867 = vmatprep.mubr.msk.f32.mxu1 %vm2975_vm0, %v2974_v0  ;;  %2871 = vmatpush3.msk.msra.mxu0 %vm698_vm3, %v3094_v55 }
 0x222   : > { %2872 = vmatprep.mubr.msk.f32.mxu0 %vm2975_vm0, %v2974_v0  ;;  %2875 = vmatprep.subr.mxu1 %v2974_v0 }
 0x223   : > { %2868 = vmatmul.mubr.msk.f32.vlgmr.msra.gmra.mxu1 %vm694_vm4, %v1321_v10  ;;  %2880 = vmatprep.subr.mxu0 %v2974_v0 }
 0x224   : > { %2873 = vmatmul.mubr.msk.f32.vlgmr.msra.gmra.mxu0 %vm694_vm4, %v1322_v11  ;;  %2876 = vmatpush3.msk.msra.mxu1 %vm698_vm3, %v3109_v61 }
 0x225   : > { %2877 = vmatprep.mubr.msk.f32.mxu1 %vm2975_vm0, %v2974_v0  ;;  %2881 = vmatpush3.msk.msra.mxu0 %vm698_vm3, %v3070_v45 }
 0x226   : > { %2882 = vmatprep.mubr.msk.f32.mxu0 %vm2975_vm0, %v2974_v0  ;;  %2885 = vmatprep.subr.mxu1 %v2974_v0 }
 0x227   : > { %2878 = vmatmul.mubr.msk.f32.vlgmr.msra.gmra.mxu1 %vm694_vm4, %v1323_v13  ;;  %2890 = vmatprep.subr.mxu0 %v2974_v0 }
 0x228   : > { %2883 = vmatmul.mubr.msk.f32.vlgmr.msra.gmra.mxu0 %vm694_vm4, %v1628_v14  ;;  %2886 = vmatpush3.msk.msra.mxu1 %vm698_vm3, %v3076_v46 }
 0x229   : > { %2887 = vmatprep.mubr.msk.f32.mxu1 %vm2975_vm0, %v2974_v0  ;;  %2891 = vmatpush3.msk.msra.mxu0 %vm698_vm3, %v3094_v55 }
 0x22a   : > { %2892 = vmatprep.mubr.msk.f32.mxu0 %vm2975_vm0, %v2974_v0  ;;  %2895 = vmatprep.subr.mxu1 %v2974_v0 }
 0x22b   : > { %2888 = vmatmul.mubr.msk.f32.vlgmr.msra.gmra.mxu1 %vm694_vm4, %v1629_v15  ;;  %2900 = vmatprep.subr.mxu0 %v2974_v0 }
 0x22c   : > { %2893 = vmatmul.mubr.msk.f32.vlgmr.msra.gmra.mxu0 %vm694_vm4, %v1630_v16  ;;  %2896 = vmatpush3.msk.msra.mxu1 %vm698_vm3, %v3109_v61 }
 0x22d   : > { %2897 = vmatprep.mubr.msk.f32.mxu1 %vm2975_vm0, %v2974_v0  ;;  %2901 = vmatpush3.msk.msra.mxu0 %vm698_vm3, %v3070_v45 }
 0x22e   : > { %2902 = vmatprep.mubr.msk.f32.mxu0 %vm2975_vm0, %v2974_v0  ;;  %2905 = vmatprep.subr.mxu1 %v2974_v0 }
 0x22f   : > { %2898 = vmatmul.mubr.msk.f32.vlgmr.msra.gmra.mxu1 %vm694_vm4, %v1631_v18  ;;  %2910 = vmatprep.subr.mxu0 %v2974_v0 }
 0x230   : > { %2903 = vmatmul.mubr.msk.f32.vlgmr.msra.gmra.mxu0 %vm694_vm4, %v1936_v19  ;;  %2906 = vmatpush3.msk.msra.mxu1 %vm698_vm3, %v3076_v46 }
 0x231   : > { %2907 = vmatprep.mubr.msk.f32.mxu1 %vm2975_vm0, %v2974_v0  ;;  %2911 = vmatpush3.msk.msra.mxu0 %vm698_vm3, %v3094_v55 }
 0x232   : > { %2912 = vmatprep.mubr.msk.f32.mxu0 %vm2975_vm0, %v2974_v0  ;;  %2915 = vmatprep.subr.mxu1 %v2974_v0 }
 0x233   : > { %2908 = vmatmul.mubr.msk.f32.vlgmr.msra.gmra.mxu1 %vm694_vm4, %v1937_v20  ;;  %2920 = vmatprep.subr.mxu0 %v2974_v0 }
 0x234   : > { %2913 = vmatmul.mubr.msk.f32.vlgmr.msra.gmra.mxu0 %vm694_vm4, %v1938_v21  ;;  %2916 = vmatpush3.msk.msra.mxu1 %vm698_vm3, %v3109_v61 }
 0x235   : > { %2917 = vmatprep.mubr.msk.f32.mxu1 %vm2975_vm0, %v2974_v0  ;;  %2921 = vmatpush3.msk.msra.mxu0 %vm698_vm3, %v3070_v45 }
 0x236   : > { %2922 = vmatprep.mubr.msk.f32.mxu0 %vm2975_vm0, %v2974_v0  ;;  %2925 = vmatprep.subr.mxu1 %v2974_v0 }
 0x237   : > { %2918 = vmatmul.mubr.msk.f32.vlgmr.msra.gmra.mxu1 %vm694_vm4, %v1939_v23  ;;  %2930 = vmatprep.subr.mxu0 %v2974_v0  ;;  %v2543_v23 = vrot.slane %v689_v57, %v2542_v9 }
 0x238   : > { %2923 = vmatmul.mubr.msk.f32.vlgmr.msra.gmra.mxu0 %vm694_vm4, %v2244_v24  ;;  %2926 = vmatpush3.msk.msra.mxu1 %vm698_vm3, %v3076_v46 }
 0x239   : > { %2927 = vmatprep.mubr.msk.f32.mxu1 %vm2975_vm0, %v2974_v0  ;;  %2931 = vmatpush3.msk.msra.mxu0 %vm698_vm3, %v3094_v55  ;;  %v1618_v55 = vsub.s32 2, %v1001_v48 }
 0x23a   : > { %2932 = vmatprep.mubr.msk.f32.mxu0 %vm2975_vm0, %v2974_v0  ;;  %2935 = vmatprep.subr.mxu1 %v2974_v0 }
 0x23b   : > { %2928 = vmatmul.mubr.msk.f32.vlgmr.msra.gmra.mxu1 %vm694_vm4, %v2245_v25  ;;  %v1619_v1 = vrot.slane %v689_v57, %v1618_v55 }
 0x23c   : > { %2933 = vmatmul.mubr.msk.f32.vlgmr.msra.gmra.mxu0 %vm694_vm4, %v2246_v26  ;;  %2936 = vmatpush3.msk.msra.mxu1 %vm698_vm3, %v3109_v61 }
 0x23d   : > { %2937 = vmatprep.mubr.msk.f32.mxu1 %vm2975_vm0, %v2974_v0 }
 0x23f   : > { %2938 = vmatmul.mubr.msk.f32.vlgmr.msra.gmra.mxu1 %vm694_vm4, %v2247_v27 }
 0x2cf   : > { %v768_v28 = vpop.f32.mrf.mxu0 }
 0x2d0   : > { %v1004_v10 = vmul.f32 %v1003_v63, %v768_v28 }
 0x2d1   : > { %v2824_v29 = vpop.f32.mrf.mxu0 }
 0x2d3   : > { %v844_v30 = vpop.f32.mrf.mxu1 }
 0x2d4   : > { %v920_v31 = vpop.f32.mrf.mxu0  ;;  %v1005_v20 = vmul.f32 %v1003_v63, %v844_v30 }
 0x2d5   : > { %v2829_v32 = vpop.f32.mrf.mxu1  ;;  %v1006_v24 = vmul.f32 %v1003_v63, %v920_v31 }
 0x2d6   : > { %v2834_v33 = vpop.f32.mrf.mxu0 }
 0x2d7   : > { %v3281_v34 = vpop.f32.mrf.mxu1 }
 0x2d8   : > { %v1085_v35 = vpop.f32.mrf.mxu0 }
 0x2d9   : > { %v2839_v36 = vpop.f32.mrf.mxu1  ;;  %v1312_v5 = vmul.f32 %v1311_v59, %v1085_v35 }
 0x2da   : > { %v2844_v37 = vpop.f32.mrf.mxu0 }
 0x2db   : > { %v1158_v38 = vpop.f32.mrf.mxu1  ;;  %v1316_v16 = vadd.f32 %v1312_v5, %v1004_v10 }
 0x2dc   : > { %v1231_v39 = vpop.f32.mrf.mxu0  ;;  %v1313_v14 = vmul.f32 %v1311_v59, %v1158_v38 }
 0x2dd   : > { %v2849_v40 = vpop.f32.mrf.mxu1  ;;  %v1314_v17 = vmul.f32 %v1311_v59, %v1231_v39 }
 0x2de   : > { %v2854_v41 = vpop.f32.mrf.mxu0  ;;  %v1317_v32 = vadd.f32 %v1313_v14, %v1005_v20  ;;  %v1007_v40 = vmul.f32 %v1003_v63, %v3281_v34 }
 0x2df   : > { %v1304_v0 = vpop.f32.mrf.mxu1  ;;  %v1318_v36 = vadd.f32 %v1314_v17, %v1006_v24 }
 0x2e0   : > { %v1393_v42 = vpop.f32.mrf.mxu0  ;;  %v1315_v28 = vmul.f32 %v1311_v59, %v1304_v0 }
 0x2e1   : > { %v2859_v44 = vpop.f32.mrf.mxu1  ;;  %v1620_v11 = vmul.f32 %v1619_v1, %v1393_v42 }
 0x2e2   : > { %v2864_v45 = vpop.f32.mrf.mxu0  ;;  %v1319_v48 = vadd.f32 %v1315_v28, %v1007_v40 }
 0x2e3   : > { %v1466_v46 = vpop.f32.mrf.mxu1  ;;  %v1624_v25 = vadd.f32 %v1620_v11, %v1316_v16 }
 0x2e4   : > { %v1539_v47 = vpop.f32.mrf.mxu0  ;;  %v1621_v21 = vmul.f32 %v1619_v1, %v1466_v46 }
 0x2e5   : > { %v2869_v49 = vpop.f32.mrf.mxu1  ;;  %v1622_v26 = vmul.f32 %v1619_v1, %v1539_v47 }
 0x2e6   : > { %v2874_v50 = vpop.f32.mrf.mxu0  ;;  %v1625_v30 = vadd.f32 %v1621_v21, %v1317_v32 }
 0x2e7   : > { %v1612_v52 = vpop.f32.mrf.mxu1  ;;  %v1626_v31 = vadd.f32 %v1622_v26, %v1318_v36 }
 0x2e8   : > { %v1701_v53 = vpop.f32.mrf.mxu0  ;;  %v1623_v41 = vmul.f32 %v1619_v1, %v1612_v52 }
 0x2e9   : > { %v2879_v56 = vpop.f32.mrf.mxu1  ;;  %v1928_v18 = vmul.f32 %v1927_v6, %v1701_v53 }
 0x2ea   : > { %v2884_v58 = vpop.f32.mrf.mxu0  ;;  %v1627_v52 = vadd.f32 %v1623_v41, %v1319_v48 }
 0x2eb   : > { %v1774_v61 = vpop.f32.mrf.mxu1  ;;  %v1932_v37 = vadd.f32 %v1928_v18, %v1624_v25 }
 0x2ec   : > { %v1847_v62 = vpop.f32.mrf.mxu0  ;;  %v1929_v33 = vmul.f32 %v1927_v6, %v1774_v61 }
 0x2ed   : > { %v2889_v2 = vpop.f32.mrf.mxu1  ;;  %v1930_v38 = vmul.f32 %v1927_v6, %v1847_v62 }
 0x2ee   : > { %v2894_v4 = vpop.f32.mrf.mxu0  ;;  %v1933_v0 = vadd.f32 %v1929_v33, %v1625_v30 }
 0x2ef   : > { %v1920_v7 = vpop.f32.mrf.mxu1  ;;  %v1934_v51 = vadd.f32 %v1930_v38, %v1626_v31 }
 0x2f0   : > { %v2009_v8 = vpop.f32.mrf.mxu0  ;;  %v1931_v49 = vmul.f32 %v1927_v6, %v1920_v7 }
 0x2f1   : > { %v2899_v13 = vpop.f32.mrf.mxu1  ;;  %v2236_v27 = vmul.f32 %v2235_v12, %v2009_v8 }
 0x2f2   : > { %v2904_v15 = vpop.f32.mrf.mxu0  ;;  %v1935_v61 = vadd.f32 %v1931_v49, %v1627_v52 }
 0x2f3   : > { %v2082_v19 = vpop.f32.mrf.mxu1  ;;  %v2240_v44 = vadd.f32 %v2236_v27, %v1932_v37 }
 0x2f4   : > { %v2155_v22 = vpop.f32.mrf.mxu0  ;;  %v2237_v42 = vmul.f32 %v2235_v12, %v2082_v19 }
 0x2f5   : > { %v2909_v29 = vpop.f32.mrf.mxu1  ;;  %v2238_v45 = vmul.f32 %v2235_v12, %v2155_v22 }
 0x2f6   : > { %v2914_v35 = vpop.f32.mrf.mxu0  ;;  %v2241_v54 = vadd.f32 %v2237_v42, %v1933_v0 }
 0x2f7   : > { %v2228_v39 = vpop.f32.mrf.mxu1  ;;  %v2242_v58 = vadd.f32 %v2238_v45, %v1934_v51 }
 0x2f8   : > { %v2317_v43 = vpop.f32.mrf.mxu0  ;;  %v2239_v55 = vmul.f32 %v2235_v12, %v2228_v39 }
 0x2f9   : > { %v2544_v46 = vmul.f32 %v2543_v23, %v2317_v43  ;;  %v2919_v47 = vpop.f32.mrf.mxu1 }
 0x2fa   : > { %v2924_v50 = vpop.f32.mrf.mxu0  ;;  %v2243_v3 = vadd.f32 %v2239_v55, %v1935_v61 }
 0x2fb   : > { %v2548_v34 = vadd.f32 %v2544_v46, %v2240_v44  ;;  %v2390_v53 = vpop.f32.mrf.mxu1 }
 0x2fc   : > { %v2545_v56 = vmul.f32 %v2543_v23, %v2390_v53  ;;  %v2463_v57 = vpop.f32.mrf.mxu0 }
 0x2fd   : > { %2553 = vst.msk [vmem:[%s305_s7] sm:$0x7f] %vm2552_vm5, %v2548_v34  ;;  %v2546_v59 = vmul.f32 %v2543_v23, %v2463_v57  ;;  %v2929_v60 = vpop.f32.mrf.mxu1 }
 0x2fe   : > { %v2549_v62 = vadd.f32 %v2545_v56, %v2241_v54  ;;  %v2934_v63 = vpop.f32.mrf.mxu0 }
 0x2ff   : > { %v2550_v1 = vadd.f32 %v2546_v59, %v2242_v58  ;;  %v2536_v2 = vpop.f32.mrf.mxu1 }
 0x300   : > { %2554 = vst.msk [vmem:[%s305_s7 + $0x8] sm:$0x7f] %vm2552_vm5, %v2549_v62  ;;  %v2547_v4 = vmul.f32 %v2543_v23, %v2536_v2 }
 0x301   : > { %2555 = vst.msk [vmem:[%s305_s7 + $0x10] sm:$0x7f] %vm2552_vm5, %v2550_v1  ;;  %v2939_v5 = vpop.f32.mrf.mxu1 }
 0x302   : > { %v2551_v6 = vadd.f32 %v2547_v4, %v2243_v3 }
 0x304   : > { %2556 = vst.msk [vmem:[%s305_s7 + $0x18] sm:$0x7f] %vm2552_vm5, %v2551_v6 }
 0x305 PF: > { %s17_s21 = sadd.s32 1, %s2972_s21  }
 0x306   : > { %p14_p4 = scmp.ge.s32.totalorder %s17_s21, 4  }
 0x308   :  { %16 = sbr.rel (!%p14_p4) target bundleno = 1 (0x1), region = 88 }

</bundles_post_ra>
